<compile_context>
chip_gen: v5e
topology: v5e:2x2
jax: 0.10.0
libtpu: 0.0.40
codegen_flags: <defaults>
</compile_context>

<pallas_src>
from typing import NamedTuple

import jax
import jax.numpy as jnp
from jax.experimental import pallas as pl
from jax.experimental.pallas import tpu as pltpu


# ----------------------------------------------------------------------------
# Tile planning helpers
# ----------------------------------------------------------------------------

def _round_up(x: int, m: int) -> int:
    return (x + m - 1) // m * m


def _pick_tile_minpad(dim: int, candidates) -> tuple[int, int]:
    """Largest candidate tile that achieves the minimal padded size."""
    padded = [(_round_up(dim, t), t) for t in candidates]
    min_pad = min(p for p, _ in padded)
    best_t = max(t for p, t in padded if p == min_pad)
    return best_t, min_pad


def _plan_k(hidden: int) -> tuple[int, int]:
    """K tile (reduction axis): maximise tk, then pad H up to a multiple."""
    aligned = _round_up(hidden, 128)
    if aligned <= 2048:
        return aligned, aligned            # single K step, minimal padding
    return _pick_tile_minpad(hidden, (2048, 1792, 1536, 1280, 1024))


def _plan_n(classes: int) -> tuple[int, int]:
    """N tile (output classes): prefer 512/384/256 when padding allows."""
    return _pick_tile_minpad(classes, (512, 384, 256, 128))


def _plan_m(batch: int) -> tuple[int, int]:
    """M tile: minimise padding waste; keep grid_M small so W is not
    re-streamed more often than necessary (W index_map ignores i)."""
    if batch <= 512:
        tm = _round_up(max(batch, 16), 16)
        return tm, tm
    return _pick_tile_minpad(batch, (512, 384, 256, 192, 128))


def _vmem_limit_bytes() -> int:
    """~3/4 of physical VMEM, capped at 96 MiB (safe on v5e/v6e/v7x)."""
    cap = 64 * 1024 * 1024
    try:
        info = pltpu.get_tpu_info()
        cap = getattr(info, "vmem_capacity_bytes", None) or cap
    except Exception:  # pragma: no cover - conservative fallback
        pass
    return min(96 * 1024 * 1024, (int(cap) * 3) // 4)


# ----------------------------------------------------------------------------
# Kernels
# ----------------------------------------------------------------------------

def temp_scale_grid_kernel(temp_ref, x_ref, w_ref, b_ref, o_ref):
    """One (tm, tn) output tile, reduced over the K grid axis.

    temp_ref : SMEM (1,) f32      -- scalar-prefetched temperature
    x_ref    : VMEM (tm, tk) bf16 -- input tile
    w_ref    : VMEM (tk, tn) bf16 -- weight tile
    b_ref    : VMEM (1, tn) f32   -- bias tile
    o_ref    : VMEM (tm, tn) f32  -- output tile; doubles as the f32
                                     accumulator (resident across K steps)
    """
    k = pl.program_id(2)

    @pl.when(k == 0)
    def _init():
        o_ref[...] = jnp.zeros_like(o_ref)

    o_ref[...] += jnp.dot(x_ref[...], w_ref[...],
                          preferred_element_type=jnp.float32)

    @pl.when(k == pl.num_programs(2) - 1)
    def _finalize():
        # Scalar reciprocal + tile multiply (<=1 ulp from true division).
        inv_t = 1.0 / temp_ref[0]
        o_ref[...] = (o_ref[...] + b_ref[...]) * inv_t


def temp_scale_single_block_kernel(temp_ref, x_ref, w_ref, b_ref, o_ref):
    """Un-gridded fast path for tiny problems (whole problem in one block)."""
    inv_t = 1.0 / temp_ref[0]
    logits = jnp.dot(x_ref[...], w_ref[...],
                     preferred_element_type=jnp.float32) + b_ref[...]
    o_ref[...] = (logits * inv_t).astype(o_ref.dtype)


# ----------------------------------------------------------------------------
# Wrappers
# ----------------------------------------------------------------------------

class PreparedHead(NamedTuple):
    """Pre-padded, pre-cast classifier head (built once, reused per call)."""
    w_padded: jax.Array   # (K_pad, N_pad) compute_dtype
    b_padded: jax.Array   # (1, N_pad) f32
    hidden: int
    classes: int
    tk: int
    tn: int


def prepare_head(w, b, *, compute_dtype=jnp.bfloat16) -> PreparedHead:
    """Hoists the weight pad + cast out of the per-call hot path."""
    H, C = w.shape
    assert b.shape == (C,)
    tk, K_pad = _plan_k(H)
    tn, N_pad = _plan_n(C)

    w_p = w
    if (K_pad, N_pad) != (H, C):
        w_p = jnp.pad(w, ((0, K_pad - H), (0, N_pad - C)))
    if w_p.dtype != compute_dtype:
        w_p = w_p.astype(compute_dtype)

    b_p = b.astype(jnp.float32)
    if N_pad != C:
        b_p = jnp.pad(b_p, (0, N_pad - C))
    b_p = b_p.reshape(1, N_pad)

    return PreparedHead(w_p, b_p, H, C, tk, tn)


def temperature_scale_predict(x, head: PreparedHead, temperature):
    """(x @ W + b) / temperature with a cached, padded head."""
    B, H = x.shape
    assert H == head.hidden
    K_pad, N_pad = head.w_padded.shape
    C = head.classes
    compute_dtype = head.w_padded.dtype

    tm, M_pad = _plan_m(B)
    tk, tn = head.tk, head.tn

    # Pad / cast x only when needed (skip entirely for aligned bf16 inputs).
    x_p = x
    if (M_pad, K_pad) != (B, H):
        x_p = jnp.pad(x, ((0, M_pad - B), (0, K_pad - H)))
    if x_p.dtype != compute_dtype:
        x_p = x_p.astype(compute_dtype)

    temp = jnp.asarray(temperature, dtype=jnp.float32).reshape(1)

    grid_m, grid_n, grid_k = M_pad // tm, N_pad // tn, K_pad // tk

    # Make sure at least one *parallel* grid axis has >= 2 blocks so v7x's
    # second TensorCore gets work (one extra grid step elsewhere is ~free).
    if grid_m == 1 and grid_n == 1 and N_pad >= 512:
        half = N_pad // 2
        tn = half if half % 128 == 0 else 128
        grid_n = N_pad // tn

    vmem_limit = _vmem_limit_bytes()

    if grid_m == 1 and grid_n == 1 and grid_k == 1:
        # Tiny problem: no pipelining to exploit -> single-block fast path.
        out_padded = pl.pallas_call(
            temp_scale_single_block_kernel,
            out_shape=jax.ShapeDtypeStruct((M_pad, N_pad), jnp.float32),
            in_specs=[
                pl.BlockSpec(memory_space=pltpu.MemorySpace.SMEM),   # temp
                pl.BlockSpec(memory_space=pltpu.MemorySpace.VMEM),   # x
                pl.BlockSpec(memory_space=pltpu.MemorySpace.VMEM),   # w
                pl.BlockSpec(memory_space=pltpu.MemorySpace.VMEM),   # b
            ],
            out_specs=pl.BlockSpec(memory_space=pltpu.MemorySpace.VMEM),
            compiler_params=pltpu.CompilerParams(
                vmem_limit_bytes=vmem_limit),
        )(temp, x_p, head.w_padded, head.b_padded)
    else:
        itemsize = jnp.dtype(compute_dtype).itemsize
        cost = pl.CostEstimate(
            flops=2 * M_pad * K_pad * N_pad,
            transcendentals=0,
            bytes_accessed=(grid_n * M_pad * K_pad * itemsize   # x per N tile
                            + grid_m * K_pad * N_pad * itemsize  # w per M tile
                            + N_pad * 4                           # bias
                            + M_pad * N_pad * 4),                 # out
        )
        out_padded = pl.pallas_call(
            temp_scale_grid_kernel,
            out_shape=jax.ShapeDtypeStruct((M_pad, N_pad), jnp.float32),
            grid_spec=pltpu.PrefetchScalarGridSpec(
                num_scalar_prefetch=1,                # temperature -> SMEM
                grid=(grid_m, grid_n, grid_k),
                in_specs=[
                    pl.BlockSpec((tm, tk), lambda i, j, k, t: (i, k)),  # x
                    pl.BlockSpec((tk, tn), lambda i, j, k, t: (k, j)),  # w
                    pl.BlockSpec((1, tn), lambda i, j, k, t: (0, j)),   # bias
                ],
                out_specs=pl.BlockSpec((tm, tn), lambda i, j, k, t: (i, j)),
            ),
            compiler_params=pltpu.CompilerParams(
                dimension_semantics=("parallel", "parallel", "arbitrary"),
                vmem_limit_bytes=vmem_limit,
            ),
            cost_estimate=cost,
        )(temp, x_p, head.w_padded, head.b_padded)

    if (M_pad, N_pad) != (B, C):
        out_padded = out_padded[:B, :C]
    return out_padded


def temperature_scale_predictor(x, w, b, temperature, *,
                                compute_dtype=jnp.bfloat16):
    """One-shot convenience wrapper (prepares the head, then predicts).

    For repeated inference, call prepare_head() once and reuse the result
    with temperature_scale_predict() -- that is the performance-relevant path.
    """
    head = prepare_head(w, b, compute_dtype=compute_dtype)
    return temperature_scale_predict(x, head, temperature)


# ----------------------------------------------------------------------------
# References & self-test
# ----------------------------------------------------------------------------

def _reference_f32(x, w, b, temperature):
    logits = jnp.dot(x, w, precision=jax.lax.Precision.HIGHEST)
    return (logits + b[None, :]) / temperature


def _reference_bf16(x, w, b, temperature):
    xb = x.astype(jnp.bfloat16)
    wb = w.astype(jnp.bfloat16)
    logits = jnp.dot(xb, wb, preferred_element_type=jnp.float32)
    return (logits + b[None, :]) / temperature


if __name__ == "__main__":
    # TODO(synk): the wrapped `model` is an arbitrary nn.Module in the spec;
    # it is instantiated here as a single linear head (synthetic weights).
    key = jax.random.PRNGKey(0)
    kx, kw, kb, kx2, kw2, kb2 = jax.random.split(key, 6)

    # --- Case 1: tiny shapes from the module spec (single-block fast path) ---
    B, H, C = 8, 32, 16
    temperature = 1.5
    x = jax.random.normal(kx, (B, H), dtype=jnp.float32)
    w = jax.random.normal(kw, (H, C), dtype=jnp.float32) * 0.1
    b = jax.random.normal(kb, (C,), dtype=jnp.float32) * 0.1

    head = prepare_head(w, b)
    out = jax.block_until_ready(temperature_scale_predict(x, head, temperature))
    assert out.shape == (B, C)
    assert jnp.allclose(out, _reference_bf16(x, w, b, temperature),
                        atol=1e-4, rtol=1e-4), "case1: bf16-ref mismatch"
    assert jnp.allclose(out, _reference_f32(x, w, b, temperature),
                        atol=2e-2, rtol=2e-2), "case1: f32-ref mismatch"

    # --- Case 2: exercises the 3-D gridded path (K reduction, N tiles) ---
    B2, H2, C2 = 64, 4096, 1024
    temperature2 = 2.0
    x2 = jax.random.normal(kx2, (B2, H2), dtype=jnp.float32)
    w2 = jax.random.normal(kw2, (H2, C2), dtype=jnp.float32) * (H2 ** -0.5)
    b2 = jax.random.normal(kb2, (C2,), dtype=jnp.float32) * 0.1

    head2 = prepare_head(w2, b2)
    out2 = jax.block_until_ready(
        temperature_scale_predict(x2, head2, temperature2))
    assert out2.shape == (B2, C2)
    assert jnp.allclose(out2, _reference_bf16(x2, w2, b2, temperature2),
                        atol=5e-3, rtol=5e-3), "case2: bf16-ref mismatch"
    assert jnp.allclose(out2, _reference_f32(x2, w2, b2, temperature2),
                        atol=1e-1, rtol=1e-1), "case2: f32-ref mismatch"

    print("KERNEL_OK")
</pallas_src>

<mosaic_0001>
module attributes {stable_mosaic.version = 11 : i64} {
  func.func @temp_scale_single_block_kernel(%arg0: memref<1xf32, #tpu.memory_space<smem>>, %arg1: memref<16x128xbf16, #tpu.memory_space<vmem>>, %arg2: memref<128x128xbf16, #tpu.memory_space<vmem>>, %arg3: memref<1x128xf32, #tpu.memory_space<vmem>>, %arg4: memref<16x128xf32, #tpu.memory_space<vmem>>) attributes {dimension_semantics = [], scalar_prefetch = 0 : i64, scratch_operands = 0 : i64, tpu.core_type = #tpu.core_type<tc>} {
    %c0 = arith.constant 0 : index
    %0 = memref.load %arg0[%c0] : memref<1xf32, #tpu.memory_space<smem>>
    %cst = arith.constant 1.000000e+00 : f32
    %1 = arith.divf %cst, %0 : f32
    %c0_0 = arith.constant 0 : index
    %c0_1 = arith.constant 0 : index
    %2 = vector.load %arg1[%c0_0, %c0_1] : memref<16x128xbf16, #tpu.memory_space<vmem>>, vector<16x128xbf16>
    %c0_2 = arith.constant 0 : index
    %c0_3 = arith.constant 0 : index
    %3 = vector.load %arg2[%c0_2, %c0_3] : memref<128x128xbf16, #tpu.memory_space<vmem>>, vector<128x128xbf16>
    %cst_4 = arith.constant dense<0.000000e+00> : vector<16x128xf32>
    %4 = tpu.matmul %2, %3, %cst_4 {dimension_numbers = #tpu.dot_dimension_numbers<[1], [0], [0], [1], [0, 0, 1, 1], [], []>} : vector<16x128xbf16>, vector<128x128xbf16>, vector<16x128xf32> -> vector<16x128xf32>
    %c0_5 = arith.constant 0 : index
    %c0_6 = arith.constant 0 : index
    %5 = vector.load %arg3[%c0_5, %c0_6] : memref<1x128xf32, #tpu.memory_space<vmem>>, vector<1x128xf32>
    %6 = vector.broadcast %5 : vector<1x128xf32> to vector<16x128xf32>
    %7 = arith.addf %4, %6 : vector<16x128xf32>
    %8 = vector.broadcast %1 : f32 to vector<16x128xf32>
    %9 = arith.mulf %7, %8 : vector<16x128xf32>
    %c0_7 = arith.constant 0 : index
    %c0_8 = arith.constant 0 : index
    %10 = vector.load %arg4[%c0_7, %c0_8] : memref<16x128xf32, #tpu.memory_space<vmem>>, vector<16x128xf32>
    tpu.vector_store %arg4[%c0_7, %c0_8], %9 {strides = array<i32>} : memref<16x128xf32, #tpu.memory_space<vmem>>, vector<16x128xf32>,
    return
  }
}

</mosaic_0001>

<bundles_post_ra>
// kernel: tpu_custom_call.1
= control target key start
LH: loop header
LB: loop body
LE: loop exit
PB: predicated region body
PF: predicated region fallthrough
CT: control target
= control target key end

     0   :  { %10 = vsyncpa [#allocation4], 0  ;;  %s365_s0 = inlined_call_operand.<no memory space> [shape: f32[1], index: 0, kind: input, shape index: {}]   ;;  %s366_s1 = inlined_call_operand.hbm [shape: bf16[16,128], index: 1, kind: input, shape index: {}]   ;;  %s367_s2 = inlined_call_operand.hbm [shape: bf16[128,128], index: 2, kind: input, shape index: {}]   ;;  %s368_s3 = inlined_call_operand.vmem [shape: f32[1,128], index: 3, kind: input, shape index: {}]   ;;  %s369_s4 = inlined_call_operand.hbm [shape: f32[16,128], index: 4, kind: output, shape index: {}]  }
   0x1   :  { %11 = vsyncpa [#allocation7], 0 }
   0x2   :  { %12 = vsyncpa [#allocation5], 0  ;;  %s19_s17 = sshll.u32 %s366_s1, 4  ;;  %s318_s18 = smov [#allocation3]   ;;  %s20_s17 = int_to_ptr.hbm [resolvable:$true] %s19_s17 }
   0x3   :  { %s21_s19 = sshll.u32 %s318_s18, 4  ;;  %s32_s22 = sshll.u32 %s367_s2, 4  ;;  %s22_s19 = int_to_ptr.vmem [resolvable:$true] %s21_s19  ;;  %s33_s22 = int_to_ptr.hbm [resolvable:$true] %s32_s22 }
   0x4   :  { %s319_s23 = smov 64   ;;  %s320_s24 = smov 4  }
   0x5   :  { %27 = dma.hbm_to_vmem [thread:$0]  %s20_s17, 128, %s22_s19, [#allocation4], %s319_s23, %s319_s23, %s320_s24  }
   0x6   :  { %s321_s25 = smov [#allocation6]  }
   0x7   :  { %s34_s26 = sshll.u32 %s321_s25, 4  ;;  %s35_s26 = int_to_ptr.vmem [resolvable:$true] %s34_s26 }
   0x8   :  { %40 = dma.hbm_to_vmem [thread:$0]  %s33_s22, 1024, %s35_s26, [#allocation7], %s319_s23, %s319_s23, %s320_s24  }
   0x9   :  { %312 = dma.done.wait [#allocation4], 128  }
   0xa   :  { %313 = vsyncadd [#allocation4], 4294967168 }
   0xb   :  { %314 = dma.done.wait [#allocation7], 1024  }
   0xc   :  { %315 = vsyncadd [#allocation7], 4294966272  ;;  %v227_v0 = vld [vmem:[#allocation6 + $0x38] sm:$0xff]  ;;  %v52_v1 = vstv %s365_s0  ;;  %v226_v2 = vld [vmem:[#allocation6 + $0x30] sm:$0xff]  ;;  %s322_s29 = smov [#allocation8]   ;;  %s169_s7 = sshll.u32 %s369_s4, 4  ;;  %s170_s7 = int_to_ptr.hbm [resolvable:$true] %s169_s7 }
   0xd   :  { %144 = vmatpush.bf16.msra.mxu0 %v227_v0  ;;  %238 = vrcp.f32 %v52_v1  ;;  %v225_v3 = vld [vmem:[#allocation6 + $0x28] sm:$0xff]  ;;  %v224_v6 = vld [vmem:[#allocation6 + $0x20] sm:$0xff]  ;;  %v64_v7 = vand.u32 2147483648, %v52_v1  ;;  %vm58_vm0 = vweird.f32 %v52_v1  ;;  %v62_v9 = vand.u32 2147483647, %v52_v1  ;;  %v223_v11 = vld [vmem:[#allocation6 + $0x18] sm:$0xff] }
   0xe   :  { %v222_v15 = vld [vmem:[#allocation6 + $0x10] sm:$0xff]  ;;  %v221_v17 = vld [vmem:[#allocation6 + $0x8] sm:$0xff]  ;;  %v220_v18 = vld [vmem:[#allocation6] sm:$0xff]  ;;  %s167_s30 = sshll.u32 %s322_s29, 4  ;;  %s323_s8 = smov 128   ;;  %s168_s30 = int_to_ptr.vmem [resolvable:$true] %s167_s30 }
   0xf   :  { %v65_v12 = vor.u32 1.1754944e-38, %v64_v7  ;;  %vm63_vm3 = vcmp.eq.f32.partialorder %v62_v9, 8.507059e+37  ;;  %v219_v19 = vld [vmem:[#allocation3] sm:$0xff] }
  0x10   :  { %v237_v20 = vld [vmem:[%s368_s3] ss:$0 sm:$0xff]  ;;  %s324_s3 = smov 8  }
  0x11   :  { %145 = vmatpush.bf16.msra.mxu0 %v226_v2 }
  0x13   :  { %v239_v4 = vpop.eup %238 }
  0x14   :  { %v54_v5 = vmul.f32 %v239_v4, %v52_v1  ;;  %vm59_vm1 = vweird.f32 %v239_v4 }
  0x15   :  { %146 = vmatpush.bf16.msra.mxu0 %v225_v3  ;;  %vm60_vm2 = vmor %vm58_vm0, %vm59_vm1 }
  0x16   :  { %v55_v8 = vsub.f32 1.0, %v54_v5 }
  0x18   :  { %v56_v10 = vmul.f32 %v239_v4, %v55_v8 }
  0x19   :  { %147 = vmatpush.bf16.msra.mxu0 %v224_v6 }
  0x1a   :  { %v57_v13 = vadd.f32 %v239_v4, %v56_v10 }
  0x1c   :  { %v61_v14 = vsel %vm60_vm2, %v239_v4, %v57_v13 }
  0x1d   :  { %148 = vmatpush.bf16.msra.mxu0 %v223_v11  ;;  %v66_v16 = vsel %vm63_vm3, %v65_v12, %v61_v14 }
  0x1e   :  { %228 = vpush %v66_v16 }
  0x21   :  { %149 = vmatpush.bf16.msra.mxu0 %v222_v15 }
  0x25   :  { %150 = vmatpush.bf16.msra.mxu0 %v221_v17 }
  0x29   :  { %151 = vmatpush.bf16.msra.mxu0 %v220_v18 }
  0x2c   :  { %152 = vmatmul.bf16.vlgmr.msra.gmra.mxu0 %v219_v19 }
  0x4f   :  { %s229_s28 = spop %228 }
  0x50   :  { %v158_v22 = vstv %s229_s28 }
  0xa9   :  { %v153_v21 = vpop.f32.mrf.mxu0 }
  0xaa   :  { %v154_v23 = vadd.f32 %v237_v20, %v153_v21 }
  0xac   :  { %v159_v24 = vmul.f32 %v158_v22, %v154_v23 }
  0xae   :  { %161 = vst [vmem:[#allocation8] sm:$0xff] %v159_v24 }
  0xb1   :  { %v155_v25 = vpop.f32.mrf.mxu0 }
  0xb2   :  { %v156_v26 = vadd.f32 %v237_v20, %v155_v25 }
  0xb4   :  { %v160_v27 = vmul.f32 %v158_v22, %v156_v26 }
  0xb6   :  { %162 = vst [vmem:[#allocation8 + $0x8] sm:$0xff] %v160_v27 }
  0xb7   :  { %175 = dma.vmem_to_hbm [thread:$0]  %s168_s30, 256, %s170_s7, [#allocation5], %s323_s8, %s323_s8, %s324_s3  }
  0xb8   :  { %316 = dma.done.wait [#allocation5], 256  }
  0xb9   :  { %317 = vsyncadd [#allocation5], 4294967040 }
  0xba   :  { %180 = vsyncpa [#allocation4], 1 }
  0xbb   :  { %181 = vsyncpa [#allocation7], 1 }
  0xbc   :  { %182 = vsyncpa [#allocation5], 1 }

</bundles_post_ra>
